<compile_context>
chip_gen: v7x
topology: tpu7x:2x2x1
jax: 0.10.0
libtpu: 0.0.40
codegen_flags: <defaults>
</compile_context>

<pallas_src>
import functools

import jax
import jax.numpy as jnp
from jax import lax
from jax.experimental import pallas as pl
from jax.experimental.pallas import tpu as pltpu

_VMEM_LIMIT = 32 * 1024 * 1024  # safe scoped-VMEM budget on v5e / v6e / v7x


def _cal_conv_padding(kernel_size, dilation_rate=1):
    return int(dilation_rate * (kernel_size - 1) / 2)


# ---------------------------------------------------------------------------
# Kernel 1: temporal Conv2d with kernel (1, K), stride (1, s), padding (0, (K-1)//2)
# Activations are kept in (B, C_elec, W_time, F_feat) layout, so each grid step
# handles one (batch, electrode) time series independently.
# ---------------------------------------------------------------------------
def _temporal_conv_kernel(x_ref, w_ref, b_ref, o_ref, xp_ref, *, K, stride, pad):
    # x_ref : (1, 1, W, Cin)   input time series for this (b, c)
    # w_ref : (K, Cin, F)      conv weights (tap-major)
    # b_ref : (1, F)           bias
    # o_ref : (1, 1, Wo, F)    output
    # xp_ref: (W + 2*pad, Cin) zero-padded scratch in VMEM
    W, Cin = x_ref.shape[2], x_ref.shape[3]
    Wo, F = o_ref.shape[2], o_ref.shape[3]

    # Zero-pad the time axis inside VMEM (no HBM pad copy).
    if pad > 0:
        xp_ref[pl.ds(0, pad), :] = jnp.zeros((pad, Cin), jnp.float32)
        xp_ref[pl.ds(pad + W, pad), :] = jnp.zeros((pad, Cin), jnp.float32)
    xp_ref[pl.ds(pad, W), :] = x_ref[0, 0]

    acc = jnp.zeros((Wo, F), jnp.float32) + b_ref[...]
    for k in range(K):
        if stride == 1:
            tap = xp_ref[pl.ds(k, Wo), :]                      # (Wo, Cin)
        else:
            tap = xp_ref[pl.ds(k, Wo, stride), :]              # strided taps
        wk = w_ref[k]                                          # (Cin, F)
        if Cin == 1:
            # Depth-1 contraction: keep it on the VPU (broadcast multiply-add)
            # instead of wasting an MXU pass.
            acc = acc + tap * wk
        else:
            acc = acc + jnp.dot(tap, wk, preferred_element_type=jnp.float32)
    o_ref[0, 0] = acc.astype(o_ref.dtype)


def temporal_conv(x, w, b, stride):
    """x: (B, C, W, Cin), w: (F, Cin, 1, K) torch-OIHW, b: (F,) -> (B, C, Wo, F)."""
    B, C, W, Cin = x.shape
    F, _, _, K = w.shape
    pad = _cal_conv_padding(K)
    Wp = W + 2 * pad
    Wo = (Wp - K) // stride + 1
    wk = jnp.transpose(w[:, :, 0, :], (2, 1, 0))               # (K, Cin, F)
    kernel = functools.partial(_temporal_conv_kernel, K=K, stride=stride, pad=pad)
    return pl.pallas_call(
        kernel,
        out_shape=jax.ShapeDtypeStruct((B, C, Wo, F), jnp.float32),
        grid=(B, C),
        in_specs=[pl.BlockSpec((1, 1, W, Cin), lambda bi, ci: (bi, ci, 0, 0)),
                  pl.BlockSpec((K, Cin, F), lambda bi, ci: (0, 0, 0)),
                  pl.BlockSpec((1, F), lambda bi, ci: (0, 0))],
        out_specs=pl.BlockSpec((1, 1, Wo, F), lambda bi, ci: (bi, ci, 0, 0)),
        scratch_shapes=[pltpu.VMEM((Wp, Cin), jnp.float32)],
        compiler_params=pltpu.CompilerParams(
            dimension_semantics=("parallel", "parallel"),
            vmem_limit_bytes=_VMEM_LIMIT),
    )(x, wk, b.reshape(1, F))


# ---------------------------------------------------------------------------
# Kernel 2 (fused tail): channel-collapsing conv (n_channels,1) + bias + eval-BN
# + ELU + AvgPool(count_include_pad=True) + 1x1 projection + bias, per batch item.
# ---------------------------------------------------------------------------
def _tail_kernel(x_ref, wc_ref, shift_ref, wp_ref, bp_ref, o_ref, ap_ref, *,
                 pool, pstride, ppad):
    # x_ref   : (1, C, W2, F)       temporal-conv output for this batch item
    # wc_ref  : (C, F, Fout)        channel-collapse weights, BN-scale pre-folded
    # shift_ref: (1, Fout)          folded (bias - mean)*scale + beta
    # wp_ref  : (Fout, Dm)          projection weights, 1/pool pre-folded
    # bp_ref  : (1, Dm)             projection bias
    # o_ref   : (1, Wo, Dm)         tokens for this batch item
    # ap_ref  : (W2 + 2*ppad, Fout) zero-padded post-ELU scratch (VMEM)
    C, W2 = x_ref.shape[1], x_ref.shape[2]
    Fout = wc_ref.shape[2]
    Wo = o_ref.shape[1]

    # (n_channels, 1) conv as C accumulated (W2, F) @ (F, Fout) matmuls — no data
    # transpose needed; BN scale folded into wc, BN shift + conv bias folded into shift.
    acc = jnp.zeros((W2, Fout), jnp.float32) + shift_ref[...]
    for c in range(C):
        acc = acc + jnp.dot(x_ref[0, c], wc_ref[c],
                            preferred_element_type=jnp.float32)

    # ELU(alpha=1).  Clamp before exp so the (discarded) positive branch never
    # overflows; exp(x)-1 error near 0 is ~1e-7, far inside tolerance.
    a = jnp.where(acc > 0, acc, jnp.exp(jnp.minimum(acc, 0.0)) - 1.0)

    # Zero-padded scratch => count_include_pad=True average pool semantics.
    if ppad > 0:
        ap_ref[pl.ds(0, ppad), :] = jnp.zeros((ppad, Fout), jnp.float32)
        ap_ref[pl.ds(ppad + W2, ppad), :] = jnp.zeros((ppad, Fout), jnp.float32)
    ap_ref[pl.ds(ppad, W2), :] = a

    def tap(k):
        if pstride == 1:
            return ap_ref[pl.ds(k, Wo), :]
        return ap_ref[pl.ds(k, Wo, pstride), :]

    pooled = tap(0)
    for k in range(1, pool):
        pooled = pooled + tap(k)

    # 1x1 projection (1/pool already folded into wp_ref) + bias.
    o_ref[0] = (jnp.dot(pooled, wp_ref[...], preferred_element_type=jnp.float32)
                + bp_ref[...]).astype(o_ref.dtype)


def tokenizer_tail(x, params):
    """x: (B, C, W2, F) -> (B, token_len, d_model)."""
    B, C, W2, F = x.shape
    Fout = params["chan_w"].shape[0]
    d_model = params["proj_w"].shape[1]

    scale = params["bn_gamma"] * lax.rsqrt(params["bn_var"] + 1e-5)
    shift2 = (params["chan_b"] - params["bn_mean"]) * scale + params["bn_beta"]
    # (Fout, Fin, C, 1) -> (C, Fin, Fout), fold BN scale into the output columns.
    wc = jnp.transpose(params["chan_w"][:, :, :, 0], (2, 1, 0)) * scale[None, None, :]

    pool, pstride = params["pool_size"], params["pool_stride"]
    ppad = _cal_conv_padding(pool)
    Wp2 = W2 + 2 * ppad
    Wo = (Wp2 - pool) // pstride + 1
    wp = params["proj_w"] / float(pool)                         # fold pool divisor
    bp = params["proj_b"].reshape(1, d_model)

    kernel = functools.partial(_tail_kernel, pool=pool, pstride=pstride, ppad=ppad)
    return pl.pallas_call(
        kernel,
        out_shape=jax.ShapeDtypeStruct((B, Wo, d_model), jnp.float32),
        grid=(B,),
        in_specs=[pl.BlockSpec((1, C, W2, F), lambda bi: (bi, 0, 0, 0)),
                  pl.BlockSpec((C, F, Fout), lambda bi: (0, 0, 0)),
                  pl.BlockSpec((1, Fout), lambda bi: (0, 0)),
                  pl.BlockSpec((Fout, d_model), lambda bi: (0, 0)),
                  pl.BlockSpec((1, d_model), lambda bi: (0, 0))],
        out_specs=pl.BlockSpec((1, Wo, d_model), lambda bi: (bi, 0, 0)),
        scratch_shapes=[pltpu.VMEM((Wp2, Fout), jnp.float32)],
        compiler_params=pltpu.CompilerParams(
            dimension_semantics=("parallel",),
            vmem_limit_bytes=_VMEM_LIMIT),
    )(x, wc, shift2.reshape(1, Fout), wp, bp)


# ---------------------------------------------------------------------------
# Full ConvTokenizer forward (eval semantics)
# ---------------------------------------------------------------------------
def conv_tokenizer_forward(X, params):
    """X: (B, seq_len, n_channels) -> (B, token_len, d_model)."""
    # NCHW bookkeeping is replaced by (B, electrode, time, feature) layout so the
    # temporal convs and the fused tail never need big activation transposes.
    x = X.transpose(0, 2, 1)[..., None]                         # (B, C, T, Cin=1)
    for wi, bi, si in zip(params["conv_w"], params["conv_b"], params["n_strides"]):
        x = temporal_conv(x, wi, bi, si)                        # (B, C, Wo, F)
    # Dropout: identity at inference.
    return tokenizer_tail(x, params)                            # (B, token_len, d_model)


# ---------------------------------------------------------------------------
# Pure-JAX reference (lax.conv / reduce_window) for correctness checking.
# ---------------------------------------------------------------------------
def reference_forward(X, params):
    dn = ("NCHW", "OIHW", "NCHW")
    x = X.transpose(0, 2, 1)[:, None]
    for w, b, s in zip(params["conv_w"], params["conv_b"], params["n_strides"]):
        k = w.shape[-1]
        p = _cal_conv_padding(k)
        x = lax.conv_general_dilated(x, w, (1, s), ((0, 0), (p, p)),
                                     dimension_numbers=dn)
        x = x + b[None, :, None, None]
    x = lax.conv_general_dilated(x, params["chan_w"], (1, 1), ((0, 0), (0, 0)),
                                 dimension_numbers=dn)
    x = x + params["chan_b"][None, :, None, None]
    scale = params["bn_gamma"] * lax.rsqrt(params["bn_var"] + 1e-5)
    shift = params["bn_beta"] - params["bn_mean"] * scale
    x = x * scale[None, :, None, None] + shift[None, :, None, None]
    x = jnp.where(x > 0, x, jnp.exp(jnp.minimum(x, 0.0)) - 1.0)
    pool, pstride = params["pool_size"], params["pool_stride"]
    pp = _cal_conv_padding(pool)
    x = lax.reduce_window(x, 0.0, lax.add,
                          window_dimensions=(1, 1, 1, pool),
                          window_strides=(1, 1, 1, pstride),
                          padding=((0, 0), (0, 0), (0, 0), (pp, pp))) / pool
    w_proj = params["proj_w"].T[:, :, None, None]               # OIHW (d_model,F,1,1)
    x = lax.conv_general_dilated(x, w_proj, (1, 1), ((0, 0), (0, 0)),
                                 dimension_numbers=dn)
    x = x + params["proj_b"][None, :, None, None]
    x = x.transpose(0, 2, 3, 1)
    return x.reshape(x.shape[0], -1, x.shape[-1])


# ---------------------------------------------------------------------------
# Deterministic parameter init (shapes from ConvTokenizer.__init__)
# ---------------------------------------------------------------------------
def init_params(key, n_channels, n_filters, kernel_sizes, n_strides,
                pool_size, pool_stride, d_model):
    ks = jax.random.split(key, 10)
    conv_w, conv_b = [], []
    cin = 1
    for i, (f, k) in enumerate(zip(n_filters, kernel_sizes)):
        conv_w.append(0.2 * jax.random.normal(jax.random.fold_in(ks[0], i),
                                              (f, cin, 1, k), jnp.float32))
        conv_b.append(0.05 * jax.random.normal(jax.random.fold_in(ks[1], i),
                                               (f,), jnp.float32))
        cin = f
    f_last = n_filters[-1]
    return dict(
        conv_w=conv_w, conv_b=conv_b,
        n_strides=list(n_strides),
        chan_w=0.2 * jax.random.normal(ks[2], (f_last, f_last, n_channels, 1), jnp.float32),
        chan_b=0.05 * jax.random.normal(ks[3], (f_last,), jnp.float32),
        bn_gamma=1.0 + 0.1 * jax.random.normal(ks[4], (f_last,), jnp.float32),
        bn_beta=0.1 * jax.random.normal(ks[5], (f_last,), jnp.float32),
        bn_mean=0.1 * jax.random.normal(ks[6], (f_last,), jnp.float32),
        bn_var=1.0 + 0.1 * jax.random.uniform(ks[7], (f_last,), jnp.float32),
        pool_size=pool_size, pool_stride=pool_stride,
        proj_w=0.2 * jax.random.normal(ks[8], (f_last, d_model), jnp.float32),
        proj_b=0.05 * jax.random.normal(ks[9], (d_model,), jnp.float32),
    )


if __name__ == "__main__":
    # Small, module-consistent config (B=2, seq_len=16, n_channels=4, d_model=32).
    B, seq_len, n_channels = 2, 16, 4
    n_filters = [8, 16]
    kernel_sizes = [3, 3]
    n_strides = [1, 2]
    pool_size, pool_stride = 3, 2
    d_model = 32

    key = jax.random.PRNGKey(0)
    kx, kp = jax.random.split(key)
    X = jax.random.normal(kx, (B, seq_len, n_channels), jnp.float32)
    params = init_params(kp, n_channels, n_filters, kernel_sizes, n_strides,
                         pool_size, pool_stride, d_model)

    out = conv_tokenizer_forward(X, params)
    out = jax.block_until_ready(out)

    ref = reference_forward(X, params)
    assert out.shape == ref.shape == (B, 4, d_model), (out.shape, ref.shape)
    assert jnp.allclose(out, ref, atol=1e-4, rtol=1e-4), \
        float(jnp.max(jnp.abs(out - ref)))
    print("KERNEL_OK")
</pallas_src>

<mosaic_0001>
module attributes {stable_mosaic.version = 11 : i64} {
  func.func @_temporal_conv_kernel(%arg0: i32, %arg1: i32, %arg2: memref<1x1x16x1xf32, #tpu.memory_space<vmem>>, %arg3: memref<3x1x8xf32, #tpu.memory_space<vmem>>, %arg4: memref<1x8xf32, #tpu.memory_space<vmem>>, %arg5: memref<1x1x16x8xf32, #tpu.memory_space<vmem>>, %arg6: memref<18x1xf32, #tpu.memory_space<vmem>>) attributes {dimension_semantics = [#tpu.dimension_semantics<parallel>, #tpu.dimension_semantics<parallel>], iteration_bounds = array<i64: 2, 4>, scalar_prefetch = 0 : i64, scratch_operands = 1 : i64, tpu.core_type = #tpu.core_type<tc>, window_params = [{transform_indices = @transform_0, window_bounds = array<i64: 1, 1, 16, 1>}, {pipeline_mode = #tpu.pipeline_mode<synchronous>, transform_indices = @transform_1, window_bounds = array<i64: 3, 1, 8>}, {pipeline_mode = #tpu.pipeline_mode<synchronous>, transform_indices = @transform_2, window_bounds = array<i64: 1, 8>}, {transform_indices = @transform_3, window_bounds = array<i64: 1, 1, 16, 8>}]} {
    %cst = arith.constant 0.000000e+00 : f32
    %0 = vector.broadcast %cst : f32 to vector<1x1xf32>
    %c0 = arith.constant 0 : index
    %c0_0 = arith.constant 0 : index
    %1 = vector.load %arg6[%c0, %c0_0] : memref<18x1xf32, #tpu.memory_space<vmem>>, vector<1x1xf32>
    tpu.vector_store %arg6[%c0, %c0_0], %0 {strides = array<i32>} : memref<18x1xf32, #tpu.memory_space<vmem>>, vector<1x1xf32>,
    %cst_1 = arith.constant 0.000000e+00 : f32
    %2 = vector.broadcast %cst_1 : f32 to vector<1x1xf32>
    %c17 = arith.constant 17 : index
    %c0_2 = arith.constant 0 : index
    %3 = vector.load %arg6[%c17, %c0_2] : memref<18x1xf32, #tpu.memory_space<vmem>>, vector<1x1xf32>
    tpu.vector_store %arg6[%c17, %c0_2], %2 {strides = array<i32>} : memref<18x1xf32, #tpu.memory_space<vmem>>, vector<1x1xf32>,
    %c0_3 = arith.constant 0 : index
    %c0_4 = arith.constant 0 : index
    %c0_5 = arith.constant 0 : index
    %c0_6 = arith.constant 0 : index
    %4 = vector.load %arg2[%c0_3, %c0_4, %c0_5, %c0_6] : memref<1x1x16x1xf32, #tpu.memory_space<vmem>>, vector<1x1x16x1xf32>
    %5 = vector.shape_cast %4 : vector<1x1x16x1xf32> to vector<16x1xf32>
    %c1 = arith.constant 1 : index
    %c0_7 = arith.constant 0 : index
    %6 = vector.load %arg6[%c1, %c0_7] : memref<18x1xf32, #tpu.memory_space<vmem>>, vector<16x1xf32>
    tpu.vector_store %arg6[%c1, %c0_7], %5 {strides = array<i32>} : memref<18x1xf32, #tpu.memory_space<vmem>>, vector<16x1xf32>,
    %cst_8 = arith.constant 0.000000e+00 : f32
    %7 = vector.broadcast %cst_8 : f32 to vector<16x8xf32>
    %c0_9 = arith.constant 0 : index
    %c0_10 = arith.constant 0 : index
    %8 = vector.load %arg4[%c0_9, %c0_10] : memref<1x8xf32, #tpu.memory_space<vmem>>, vector<1x8xf32>
    %9 = vector.broadcast %8 : vector<1x8xf32> to vector<16x8xf32>
    %10 = arith.addf %7, %9 : vector<16x8xf32>
    %c0_11 = arith.constant 0 : index
    %c0_12 = arith.constant 0 : index
    %11 = vector.load %arg6[%c0_11, %c0_12] : memref<18x1xf32, #tpu.memory_space<vmem>>, vector<16x1xf32>
    %c0_13 = arith.constant 0 : index
    %c0_14 = arith.constant 0 : index
    %c0_15 = arith.constant 0 : index
    %12 = vector.load %arg3[%c0_13, %c0_14, %c0_15] : memref<3x1x8xf32, #tpu.memory_space<vmem>>, vector<1x1x8xf32>
    %13 = vector.shape_cast %12 : vector<1x1x8xf32> to vector<1x8xf32>
    %14 = vector.broadcast %11 : vector<16x1xf32> to vector<16x8xf32>
    %15 = vector.broadcast %13 : vector<1x8xf32> to vector<16x8xf32>
    %16 = arith.mulf %14, %15 : vector<16x8xf32>
    %17 = arith.addf %10, %16 : vector<16x8xf32>
    %c1_16 = arith.constant 1 : index
    %c0_17 = arith.constant 0 : index
    %18 = vector.load %arg6[%c1_16, %c0_17] : memref<18x1xf32, #tpu.memory_space<vmem>>, vector<16x1xf32>
    %c1_18 = arith.constant 1 : index
    %c0_19 = arith.constant 0 : index
    %c0_20 = arith.constant 0 : index
    %19 = vector.load %arg3[%c1_18, %c0_19, %c0_20] : memref<3x1x8xf32, #tpu.memory_space<vmem>>, vector<1x1x8xf32>
    %20 = vector.shape_cast %19 : vector<1x1x8xf32> to vector<1x8xf32>
    %21 = vector.broadcast %18 : vector<16x1xf32> to vector<16x8xf32>
    %22 = vector.broadcast %20 : vector<1x8xf32> to vector<16x8xf32>
    %23 = arith.mulf %21, %22 : vector<16x8xf32>
    %24 = arith.addf %17, %23 : vector<16x8xf32>
    %c2 = arith.constant 2 : index
    %c0_21 = arith.constant 0 : index
    %25 = vector.load %arg6[%c2, %c0_21] : memref<18x1xf32, #tpu.memory_space<vmem>>, vector<16x1xf32>
    %c2_22 = arith.constant 2 : index
    %c0_23 = arith.constant 0 : index
    %c0_24 = arith.constant 0 : index
    %26 = vector.load %arg3[%c2_22, %c0_23, %c0_24] : memref<3x1x8xf32, #tpu.memory_space<vmem>>, vector<1x1x8xf32>
    %27 = vector.shape_cast %26 : vector<1x1x8xf32> to vector<1x8xf32>
    %28 = vector.broadcast %25 : vector<16x1xf32> to vector<16x8xf32>
    %29 = vector.broadcast %27 : vector<1x8xf32> to vector<16x8xf32>
    %30 = arith.mulf %28, %29 : vector<16x8xf32>
    %31 = arith.addf %24, %30 : vector<16x8xf32>
    %c0_25 = arith.constant 0 : index
    %c0_26 = arith.constant 0 : index
    %c0_27 = arith.constant 0 : index
    %c0_28 = arith.constant 0 : index
    %32 = vector.load %arg5[%c0_25, %c0_26, %c0_27, %c0_28] : memref<1x1x16x8xf32, #tpu.memory_space<vmem>>, vector<1x1x16x8xf32>
    %33 = vector.shape_cast %32 : vector<1x1x16x8xf32> to vector<16x8xf32>
    %34 = vector.shape_cast %31 : vector<16x8xf32> to vector<1x1x16x8xf32>
    tpu.vector_store %arg5[%c0_25, %c0_26, %c0_27, %c0_28], %34 {strides = array<i32>} : memref<1x1x16x8xf32, #tpu.memory_space<vmem>>, vector<1x1x16x8xf32>,
    return
  }
  func.func @transform_0(%arg0: i32, %arg1: i32) -> (i32, i32, i32, i32) {
    %c0_i32 = arith.constant 0 : i32
    %c0_i32_0 = arith.constant 0 : i32
    %c0_i32_1 = arith.constant 0 : i32
    return %arg0, %arg1, %c0_i32, %c0_i32_0 : i32, i32, i32, i32
  }
  func.func @transform_1(%arg0: i32, %arg1: i32) -> (i32, i32, i32) {
    %c0_i32 = arith.constant 0 : i32
    %c0_i32_0 = arith.constant 0 : i32
    %c0_i32_1 = arith.constant 0 : i32
    %c0_i32_2 = arith.constant 0 : i32
    return %c0_i32, %c0_i32_0, %c0_i32_1 : i32, i32, i32
  }
  func.func @transform_2(%arg0: i32, %arg1: i32) -> (i32, i32) {
    %c0_i32 = arith.constant 0 : i32
    %c0_i32_0 = arith.constant 0 : i32
    %c0_i32_1 = arith.constant 0 : i32
    return %c0_i32, %c0_i32_0 : i32, i32
  }
  func.func @transform_3(%arg0: i32, %arg1: i32) -> (i32, i32, i32, i32) {
    %c0_i32 = arith.constant 0 : i32
    %c0_i32_0 = arith.constant 0 : i32
    %c0_i32_1 = arith.constant 0 : i32
    return %arg0, %arg1, %c0_i32, %c0_i32_0 : i32, i32, i32, i32
  }
}

</mosaic_0001>

<bundles_post_ra>
// kernel: tpu_custom_call.1
= control target key start
LH: loop header
LB: loop body
LE: loop exit
PB: predicated region body
PF: predicated region fallthrough
CT: control target
= control target key end

     0   :  { %s517_s12 = smov 0   ;;  %s519_s13 = smov 0   ;;  %s587_s0 = inlined_call_operand.vmem [shape: f32[2,4,16,1], index: 0, kind: input, shape index: {}]   ;;  %s588_s1 = inlined_call_operand.vmem [shape: f32[3,1,8], index: 1, kind: input, shape index: {}]   ;;  %s589_s2 = inlined_call_operand.vmem [shape: f32[1,8], index: 2, kind: input, shape index: {}]   ;;  %s590_s3 = inlined_call_operand.vmem [shape: f32[2,4,16,8], index: 3, kind: output, shape index: {}]  }
   0x1   :  { %s521_s14 = smov 0   ;;  %s523_s15 = smov 0  }
   0x2   :  { %s525_s16 = smov 0  }
   0x3 LB: > { %s22_s17 = sadd.s32 1, %s485_s14  ;;  %s25_s18 = sadd.s32 1, %s489_s15  ;;  %s493_s16 = sphi %s525_s16, %s13_s16   ;;  %s489_s15 = sphi %s523_s15, %s594_s15   ;;  %s485_s14 = sphi %s521_s14, %s593_s14   ;;  %s481_s13 = sphi %s519_s13, %s592_s13   ;;  %s477_s12 = sphi %s517_s12, %s591_s12  }
   0x4   : > { %p23_p0 = scmp.ge.s32.totalorder %s22_s17, 4  ;;  %p396_p1 = scmp.ge.s32.totalorder %s493_s16, 1 }
   0x5   : > { %p157_p2 = scmp.lt.s32.totalorder %s493_s16, 9 }
   0x6   : > { %s596_s17 = smov (%p23_p0, %s22_s17), 0  ;;  %s598_s18 = smov (!%p23_p0, %s25_s18), %s489_s15 }
   0x7   : > { %p158_p3 = pnand %p396_p1, %p157_p2  ;;  %p27_p4 = scmp.ge.s32.totalorder %s598_s18, 2 }
   0x8   : > { %p189_p5 = scmp.lt.s32.totalorder (!%p158_p3), %s481_s13, 1  ;;  %p191_p6 = scmp.lt.s32.totalorder (!%p158_p3), %s477_s12, 3  ;;  %vm207_vm0 = vcmask (!%p158_p3), 0   ;;  %v495_v0 = vmov (!%p158_p3), 0   ;;  %v496_v1 = vmov (!%p158_p3), 0.0   ;;  %vm212_vm1 = vcmask (!%p158_p3), 7168  }
   0x9   : > { %s600_s18 = smov (%p27_p4, %s598_s18), 0  ;;  %161 = sbr.rel (%p158_p3) target bundleno = 172 (0xac), region = 32 }
   0xa   : > { %454 = vset.pattern.permute.xlu1 (!%p158_p3), %v495_v0  ;;  %453 = vset.pattern.permute.xlu0 (!%p158_p3), %v495_v0  ;;  %208 = vst.msk [vmem:[#allocation2] sm:$0x1] (!%p158_p3), %vm207_vm0, %v496_v1  ;;  %209 = vst.msk [vmem:[#allocation2 + $0x11] sm:$0x1] (!%p158_p3), %vm207_vm0, %v496_v1  ;;  %v404_v10 = vld [vmem:[%s588_s1] ss:$0 sm:$0xff] (!%p158_p3) }
   0xb   : > { %v403_v14 = vld [vmem:[%s589_s2] ss:$0 sm:$0xff] (!%p158_p3)  ;;  %v406_v15 = vld [vmem:[%s588_s1 + $0x1] ss:$0 sm:$0xff] (!%p158_p3)  ;;  %v408_v20 = vld [vmem:[%s588_s1 + $0x2] ss:$0 sm:$0xff] (!%p158_p3) }
   0xc   : > { %vm294_vm2 = vcmask (!%p158_p3), 64512  }
  0x10   : > { %s602_s13 = smov (!%p189_p5, %s481_s13), 1  ;;  %s604_s12 = smov (!%p191_p6, %s477_s12), 3 }
  0x11   : > { %s398_s19 = sshll.u32 %s602_s13, 3  ;;  %s397_s20 = sshll.u32 %s604_s12, 1 }
  0x12   : > { %s547_s21 = sadd.s32 %s398_s19, %s397_s20 }
  0x13   : > { %s399_s22 = sshll.u32 %s547_s21, 3 }
  0x14   : > { %s197_s25 = scalar_lea.vmem %s587_s0, %s399_s22  ;;  %s206_s9 = scalar_lea.vmem %s590_s3, %s399_s22 }
  0x15   : > { %v210_v2 = vld [vmem:[%s197_s25] sm:$0xff]  ;;  %v211_v3 = vld [vmem:[%s197_s25 + $0x8] sm:$0xff] }
  0x16   : > { %213 = vst.msk [vmem:[#allocation2 + $0x1] sm:$0xff] %vm212_vm1, %v210_v2  ;;  %214 = vst.msk [vmem:[#allocation2 + $0x9] sm:$0xff] %vm212_vm1, %v211_v3 }
  0x1d   : > { %v246_v4 = vld [vmem:[#allocation2 + $0x1] sm:$0xff]  ;;  %v247_v6 = vld [vmem:[#allocation2 + $0x9] sm:$0xff] }
  0x1e   : > { %v223_v5 = vld [vmem:[#allocation2] sm:$0xff]  ;;  %252 = vperm.xlu1 %454, %v246_v4   ;;  %v224_v7 = vld [vmem:[#allocation2 + $0x8] sm:$0xff] }
  0x1f   : > { %228 = vperm.xlu0 %453, %v223_v5   ;;  %v271_v8 = vld [vmem:[#allocation2 + $0xa] sm:$0xff]  ;;  %v270_v9 = vld [vmem:[#allocation2 + $0x2] sm:$0xff] }
  0x22   : > { %257 = vperm.xlu1 %454, %v247_v6  }
  0x23   : > { %233 = vperm.xlu0 %453, %v224_v7  }
  0x26   : > { %281 = vperm.xlu1 %454, %v271_v8  }
  0x27   : > { %276 = vperm.xlu0 %453, %v270_v9  }
  0x9d   : > { %v253_v11 = vpop.permute.xlu1 %252 }
  0x9e   : > { %v229_v12 = vpop.permute.xlu0 %228  ;;  %v266_v21 = vmul.f32 %v406_v15, %v253_v11 }
  0x9f   : > { %v242_v13 = vmul.f32 %v404_v10, %v229_v12 }
  0xa1   : > { %v258_v16 = vpop.permute.xlu1 %257  ;;  %v244_v18 = vadd.f32 %v403_v14, %v242_v13 }
  0xa2   : > { %v234_v17 = vpop.permute.xlu0 %233  ;;  %v267_v22 = vmul.f32 %v406_v15, %v258_v16 }
  0xa3   : > { %v243_v19 = vmul.f32 %v404_v10, %v234_v17  ;;  %v268_v28 = vadd.f32 %v266_v21, %v244_v18 }
  0xa5   : > { %v245_v23 = vadd.f32 %v403_v14, %v243_v19  ;;  %v282_v24 = vpop.permute.xlu1 %281 }
  0xa6   : > { %v277_v25 = vpop.permute.xlu0 %276  ;;  %v291_v27 = vmul.f32 %v408_v20, %v282_v24 }
  0xa7   : > { %v269_v26 = vadd.f32 %v267_v22, %v245_v23  ;;  %v290_v29 = vmul.f32 %v408_v20, %v277_v25 }
  0xa9   : > { %v293_v30 = vadd.f32 %v291_v27, %v269_v26  ;;  %v292_v31 = vadd.f32 %v290_v29, %v268_v28 }
  0xab   : > { %296 = vst.msk [vmem:[%s206_s9 + $0x8] sm:$0xff] %vm294_vm2, %v293_v30  ;;  %295 = vst.msk [vmem:[%s206_s9] sm:$0xff] %vm294_vm2, %v292_v31 }
  0xac PF: > { %s13_s16 = sadd.s32 1, %s493_s16   ;;  %s591_s12 = smov %s485_s14 }
  0xad   : > { %p10_p7 = scmp.ge.s32.totalorder %s13_s16, 10   ;;  %s592_s13 = smov %s489_s15 }
  0xae   : > { %s593_s14 = smov %s596_s17  ;;  %s594_s15 = smov %s600_s18 }
  0xaf   :  { %12 = sbr.rel (!%p10_p7) target bundleno = 3 (0x3), region = 64 }

</bundles_post_ra>
